<compile_context>
chip_gen: v6e
topology: v6e:2x2x1
jax: 0.10.0
libtpu: 0.0.40
codegen_flags: <defaults>
</compile_context>

<pallas_src>
import math
import functools

import jax
import jax.numpy as jnp
from jax.experimental import pallas as pl
from jax.experimental.pallas import tpu as pltpu

SHIFT = math.log(2.0)          # ShiftedSoftplus shift = log(2)
TILE_N = 1024                  # nodes per grid step (multiple of 16 for bf16 sublanes)


def _round_up(x, m):
    return ((x + m - 1) // m) * m


def _softplus(x):
    # numerically stable softplus: max(x,0) + log1p(exp(-|x|))  (VPU + EUP)
    return jnp.maximum(x, 0.0) + jnp.log1p(jnp.exp(-jnp.abs(x)))


def _schnet_post_kernel(x_ref, bvec_ref, w1_ref, b1_ref, w2_ref, b2_ref,
                        node_embs_ref, graph_part_ref):
    # ---- node MLP: Linear (bf16 on MXU, f32 acc) -> ShiftedSoftplus -> Linear(width 1) ----
    h = jnp.dot(x_ref[...], w1_ref[...],
                preferred_element_type=jnp.float32)                 # (tile_n, hid) f32
    h = _softplus(h + b1_ref[...]) - SHIFT                          # (tile_n, hid)
    # width-1 projection on VPU (mul) + XLU (lane reduce); avoids a second MXU pass
    ne = jnp.sum(h * w2_ref[...], axis=-1, keepdims=True) + b2_ref[0]   # (tile_n, 1)
    node_embs_ref[...] = ne

    # ---- per-tile segment partial sums (masked sum, no one-hot matmul) ----
    num_graphs = graph_part_ref.shape[-1]
    bvec = bvec_ref[...]                                            # (tile_n, 1) int32
    seg = jax.lax.broadcasted_iota(jnp.int32, (bvec.shape[0], num_graphs), 1)
    contrib = jnp.where(seg == bvec, ne, 0.0)                       # (tile_n, B)
    part = jnp.sum(contrib, axis=0, keepdims=True)                  # (1, B)  sublane reduce
    graph_part_ref[...] = part.reshape(1, 1, num_graphs)


@functools.partial(jax.jit, static_argnames=("num_graphs",))
def schnet_post(node_feats, node_batch_vec, params, num_graphs):
    """node_feats: (N, h_nf) float, node_batch_vec: (N,) int32 in [0, num_graphs)."""
    w1, b1, w2, b2 = params
    n_nodes, h_nf = node_feats.shape
    hid = w1.shape[1]

    tile_n = TILE_N if n_nodes >= TILE_N else _round_up(n_nodes, 16)
    n_pad = _round_up(n_nodes, tile_n)
    num_tiles = n_pad // tile_n

    # Pad nodes to a tile multiple; padded rows get the invalid batch id = num_graphs.
    x = jnp.pad(node_feats.astype(jnp.bfloat16), ((0, n_pad - n_nodes), (0, 0)))
    bvec = jnp.pad(node_batch_vec.astype(jnp.int32), (0, n_pad - n_nodes),
                   constant_values=num_graphs).reshape(n_pad, 1)

    cost = pl.CostEstimate(
        flops=2 * n_pad * h_nf * hid + 4 * n_pad * hid + 2 * n_pad * num_graphs,
        transcendentals=2 * n_pad * hid,
        bytes_accessed=(n_pad * h_nf * 2 + n_pad * 4 + n_pad * 4
                        + h_nf * hid * 2 + 2 * hid * 4
                        + num_tiles * num_graphs * 4),
    )

    node_embs, graph_parts = pl.pallas_call(
        _schnet_post_kernel,
        grid=(num_tiles,),
        in_specs=[
            pl.BlockSpec((tile_n, h_nf), lambda i: (i, 0)),     # node_feats (streamed, bf16)
            pl.BlockSpec((tile_n, 1), lambda i: (i, 0)),        # batch ids  (streamed)
            pl.BlockSpec((h_nf, hid), lambda i: (0, 0)),        # W1 (resident, bf16)
            pl.BlockSpec((1, hid), lambda i: (0, 0)),           # b1 (resident, f32)
            pl.BlockSpec((1, hid), lambda i: (0, 0)),           # W2 row (resident, f32)
            pl.BlockSpec(memory_space=pltpu.MemorySpace.SMEM),  # b2 scalar in SMEM
        ],
        out_specs=(
            pl.BlockSpec((tile_n, 1), lambda i: (i, 0)),            # node_embs
            pl.BlockSpec((1, 1, num_graphs), lambda i: (i, 0, 0)),  # per-tile graph partials
        ),
        out_shape=(
            jax.ShapeDtypeStruct((n_pad, 1), jnp.float32),
            jax.ShapeDtypeStruct((num_tiles, 1, num_graphs), jnp.float32),
        ),
        compiler_params=pltpu.CompilerParams(dimension_semantics=("parallel",)),
        cost_estimate=cost,
    )(x, bvec,
      w1.astype(jnp.bfloat16),
      b1.reshape(1, hid).astype(jnp.float32),
      w2.reshape(1, hid).astype(jnp.float32),
      b2.reshape(1).astype(jnp.float32))

    graph_emb = jnp.sum(graph_parts, axis=(0, 1))[:, None]          # (num_graphs, 1)
    return node_embs[:n_nodes], graph_emb


def init_params(key, h_nf):
    """Synthetic init matching nn.Linear shapes (weights stored transposed: x @ w)."""
    hid = h_nf // 2
    k1, k2, k3, k4 = jax.random.split(key, 4)
    lim1 = 1.0 / math.sqrt(h_nf)
    lim2 = 1.0 / math.sqrt(hid)
    w1 = jax.random.uniform(k1, (h_nf, hid), jnp.float32, -lim1, lim1)
    b1 = jax.random.uniform(k2, (hid,), jnp.float32, -lim1, lim1)
    w2 = jax.random.uniform(k3, (hid, 1), jnp.float32, -lim2, lim2)
    b2 = jax.random.uniform(k4, (1,), jnp.float32, -lim2, lim2)
    return w1, b1, w2, b2


def _reference(node_feats, node_batch_vec, params, num_graphs):
    # Mirrors the kernel's bf16 streaming of the first matmul for a tight comparison.
    w1, b1, w2, b2 = params
    h = jnp.dot(node_feats.astype(jnp.bfloat16), w1.astype(jnp.bfloat16),
                preferred_element_type=jnp.float32) + b1
    h = _softplus(h) - SHIFT
    node_embs = jnp.sum(h * w2.reshape(1, -1), axis=-1, keepdims=True) + b2
    graph_emb = jax.ops.segment_sum(node_embs, node_batch_vec,
                                    num_segments=num_graphs)
    return node_embs, graph_emb


if __name__ == "__main__":
    key = jax.random.PRNGKey(0)
    k_feat, k_param = jax.random.split(key)

    h_nf = 32          # hidden feature size
    n_nodes = 16       # total nodes across the batch of graphs
    num_graphs = 2

    node_feats = jax.random.normal(k_feat, (n_nodes, h_nf), jnp.float32)
    node_batch_vec = jnp.array([0] * 8 + [1] * 8, dtype=jnp.int32)
    params = init_params(k_param, h_nf)

    node_embs, graph_emb = schnet_post(node_feats, node_batch_vec, params, num_graphs)
    jax.block_until_ready((node_embs, graph_emb))

    ref_node, ref_graph = _reference(node_feats, node_batch_vec, params, num_graphs)
    assert node_embs.shape == (n_nodes, 1) and graph_emb.shape == (num_graphs, 1)
    assert jnp.allclose(node_embs, ref_node, atol=5e-3, rtol=5e-3)
    assert jnp.allclose(graph_emb, ref_graph, atol=5e-3, rtol=5e-3)

    print("KERNEL_OK")
</pallas_src>

<mosaic_0001>
module attributes {stable_mosaic.version = 11 : i64} {
  func.func @_schnet_post_kernel(%arg0: i32, %arg1: memref<16x32xbf16, #tpu.memory_space<vmem>>, %arg2: memref<16x1xi32, #tpu.memory_space<vmem>>, %arg3: memref<32x16xbf16, #tpu.memory_space<vmem>>, %arg4: memref<1x16xf32, #tpu.memory_space<vmem>>, %arg5: memref<1x16xf32, #tpu.memory_space<vmem>>, %arg6: memref<1xf32, #tpu.memory_space<smem>>, %arg7: memref<16x1xf32, #tpu.memory_space<vmem>>, %arg8: memref<1x1x2xf32, #tpu.memory_space<vmem>>) attributes {dimension_semantics = [#tpu.dimension_semantics<parallel>], iteration_bounds = array<i64: 1>, scalar_prefetch = 0 : i64, scratch_operands = 0 : i64, tpu.core_type = #tpu.core_type<tc>, window_params = [{transform_indices = @transform_0, window_bounds = array<i64: 16, 32>}, {transform_indices = @transform_1, window_bounds = array<i64: 16, 1>}, {pipeline_mode = #tpu.pipeline_mode<synchronous>, transform_indices = @transform_2, window_bounds = array<i64: 32, 16>}, {pipeline_mode = #tpu.pipeline_mode<synchronous>, transform_indices = @transform_3, window_bounds = array<i64: 1, 16>}, {pipeline_mode = #tpu.pipeline_mode<synchronous>, transform_indices = @transform_4, window_bounds = array<i64: 1, 16>}, {transform_indices = @transform_5, window_bounds = array<i64: 1>}, {transform_indices = @transform_6, window_bounds = array<i64: 16, 1>}, {transform_indices = @transform_7, window_bounds = array<i64: 1, 1, 2>}]} {
    %c0 = arith.constant 0 : index
    %c0_0 = arith.constant 0 : index
    %0 = vector.load %arg1[%c0, %c0_0] : memref<16x32xbf16, #tpu.memory_space<vmem>>, vector<16x32xbf16>
    %c0_1 = arith.constant 0 : index
    %c0_2 = arith.constant 0 : index
    %1 = vector.load %arg3[%c0_1, %c0_2] : memref<32x16xbf16, #tpu.memory_space<vmem>>, vector<32x16xbf16>
    %cst = arith.constant dense<0.000000e+00> : vector<16x16xf32>
    %2 = tpu.matmul %0, %1, %cst {dimension_numbers = #tpu.dot_dimension_numbers<[1], [0], [0], [1], [0, 0, 1, 1], [], []>} : vector<16x32xbf16>, vector<32x16xbf16>, vector<16x16xf32> -> vector<16x16xf32>
    %c0_3 = arith.constant 0 : index
    %c0_4 = arith.constant 0 : index
    %3 = vector.load %arg4[%c0_3, %c0_4] : memref<1x16xf32, #tpu.memory_space<vmem>>, vector<1x16xf32>
    %4 = vector.broadcast %3 : vector<1x16xf32> to vector<16x16xf32>
    %5 = arith.addf %2, %4 : vector<16x16xf32>
    %cst_5 = arith.constant 0.000000e+00 : f32
    %6 = vector.broadcast %cst_5 : f32 to vector<16x16xf32>
    %7 = arith.maximumf %5, %6 : vector<16x16xf32>
    %8 = math.absf %5 : vector<16x16xf32>
    %cst_6 = arith.constant 0.000000e+00 : f32
    %9 = vector.broadcast %cst_6 : f32 to vector<16x16xf32>
    %10 = arith.subf %9, %8 : vector<16x16xf32>
    %11 = math.exp %10 : vector<16x16xf32>
    %12 = math.log1p %11 : vector<16x16xf32>
    %13 = arith.addf %7, %12 : vector<16x16xf32>
    %cst_7 = arith.constant 0.693147182 : f32
    %14 = vector.broadcast %cst_7 : f32 to vector<16x16xf32>
    %15 = arith.subf %13, %14 : vector<16x16xf32>
    %c0_8 = arith.constant 0 : index
    %c0_9 = arith.constant 0 : index
    %16 = vector.load %arg5[%c0_8, %c0_9] : memref<1x16xf32, #tpu.memory_space<vmem>>, vector<1x16xf32>
    %17 = vector.broadcast %16 : vector<1x16xf32> to vector<16x16xf32>
    %18 = arith.mulf %15, %17 : vector<16x16xf32>
    %cst_10 = arith.constant dense<0.000000e+00> : vector<16xf32>
    %19 = vector.multi_reduction <add>, %18, %cst_10 [1] : vector<16x16xf32> to vector<16xf32>
    %20 = vector.shape_cast %19 : vector<16xf32> to vector<16x1xf32>
    %c0_11 = arith.constant 0 : index
    %21 = memref.load %arg6[%c0_11] : memref<1xf32, #tpu.memory_space<smem>>
    %22 = vector.broadcast %21 : f32 to vector<16x1xf32>
    %23 = arith.addf %20, %22 : vector<16x1xf32>
    %c0_12 = arith.constant 0 : index
    %c0_13 = arith.constant 0 : index
    %24 = vector.load %arg7[%c0_12, %c0_13] : memref<16x1xf32, #tpu.memory_space<vmem>>, vector<16x1xf32>
    tpu.vector_store %arg7[%c0_12, %c0_13], %23 {strides = array<i32>} : memref<16x1xf32, #tpu.memory_space<vmem>>, vector<16x1xf32>,
    %c0_14 = arith.constant 0 : index
    %c0_15 = arith.constant 0 : index
    %25 = vector.load %arg2[%c0_14, %c0_15] : memref<16x1xi32, #tpu.memory_space<vmem>>, vector<16x1xi32>
    %26 = tpu.iota {dimensions = array<i32: 1>} : vector<16x2xi32>
    %27 = vector.broadcast %25 : vector<16x1xi32> to vector<16x2xi32>
    %28 = arith.cmpi eq, %26, %27 : vector<16x2xi32>
    %cst_16 = arith.constant 0.000000e+00 : f32
    %29 = vector.shape_cast %23 : vector<16x1xf32> to vector<16x1xf32>
    %30 = vector.broadcast %29 : vector<16x1xf32> to vector<16x2xf32>
    %31 = vector.broadcast %cst_16 : f32 to vector<16x2xf32>
    %32 = arith.select %28, %30, %31 : vector<16x2xi1>, vector<16x2xf32>
    %cst_17 = arith.constant dense<0.000000e+00> : vector<2xf32>
    %33 = vector.multi_reduction <add>, %32, %cst_17 [0] : vector<16x2xf32> to vector<2xf32>
    %34 = vector.shape_cast %33 : vector<2xf32> to vector<1x2xf32>
    %35 = vector.shape_cast %34 : vector<1x2xf32> to vector<1x1x2xf32>
    %c0_18 = arith.constant 0 : index
    %c0_19 = arith.constant 0 : index
    %c0_20 = arith.constant 0 : index
    %36 = vector.load %arg8[%c0_18, %c0_19, %c0_20] : memref<1x1x2xf32, #tpu.memory_space<vmem>>, vector<1x1x2xf32>
    tpu.vector_store %arg8[%c0_18, %c0_19, %c0_20], %35 {strides = array<i32>} : memref<1x1x2xf32, #tpu.memory_space<vmem>>, vector<1x1x2xf32>,
    return
  }
  func.func @transform_0(%arg0: i32) -> (i32, i32) {
    %c0_i32 = arith.constant 0 : i32
    %c0_i32_0 = arith.constant 0 : i32
    return %arg0, %c0_i32 : i32, i32
  }
  func.func @transform_1(%arg0: i32) -> (i32, i32) {
    %c0_i32 = arith.constant 0 : i32
    %c0_i32_0 = arith.constant 0 : i32
    return %arg0, %c0_i32 : i32, i32
  }
  func.func @transform_2(%arg0: i32) -> (i32, i32) {
    %c0_i32 = arith.constant 0 : i32
    %c0_i32_0 = arith.constant 0 : i32
    %c0_i32_1 = arith.constant 0 : i32
    return %c0_i32, %c0_i32_0 : i32, i32
  }
  func.func @transform_3(%arg0: i32) -> (i32, i32) {
    %c0_i32 = arith.constant 0 : i32
    %c0_i32_0 = arith.constant 0 : i32
    %c0_i32_1 = arith.constant 0 : i32
    return %c0_i32, %c0_i32_0 : i32, i32
  }
  func.func @transform_4(%arg0: i32) -> (i32, i32) {
    %c0_i32 = arith.constant 0 : i32
    %c0_i32_0 = arith.constant 0 : i32
    %c0_i32_1 = arith.constant 0 : i32
    return %c0_i32, %c0_i32_0 : i32, i32
  }
  func.func @transform_5(%arg0: i32) -> i32 {
    %c0_i32 = arith.constant 0 : i32
    %c0_i32_0 = arith.constant 0 : i32
    return %c0_i32 : i32
  }
  func.func @transform_6(%arg0: i32) -> (i32, i32) {
    %c0_i32 = arith.constant 0 : i32
    %c0_i32_0 = arith.constant 0 : i32
    return %arg0, %c0_i32 : i32, i32
  }
  func.func @transform_7(%arg0: i32) -> (i32, i32, i32) {
    %c0_i32 = arith.constant 0 : i32
    %c0_i32_0 = arith.constant 0 : i32
    %c0_i32_1 = arith.constant 0 : i32
    return %arg0, %c0_i32, %c0_i32_0 : i32, i32, i32
  }
}

</mosaic_0001>

<bundles_post_ra>
// kernel: schnet_post.1
= control target key start
LH: loop header
LB: loop body
LE: loop exit
PB: predicated region body
PF: predicated region fallthrough
CT: control target
= control target key end

     0   :  { %v260_v1 = vmov 0.0   ;;  %vm261_vm0 = vmmov 0   ;;  %s337_s0 = inlined_call_operand.vmem [shape: bf16[16,32], index: 0, kind: input, shape index: {}]   ;;  %s338_s1 = inlined_call_operand.vmem [shape: s32[16,1], index: 1, kind: input, shape index: {}]   ;;  %s339_s2 = inlined_call_operand.vmem [shape: bf16[32,16], index: 2, kind: input, shape index: {}]   ;;  %s340_s3 = inlined_call_operand.vmem [shape: f32[1,16], index: 3, kind: input, shape index: {}]   ;;  %s341_s4 = inlined_call_operand.vmem [shape: f32[1,16], index: 4, kind: input, shape index: {}]   ;;  %s342_s5 = inlined_call_operand.<no memory space> [shape: f32[1], index: 5, kind: input, shape index: {}]   ;;  %s343_s6 = inlined_call_operand.vmem [shape: f32[16,1], index: 6, kind: output, shape index: {0}]   ;;  %s344_s7 = inlined_call_operand.hbm [shape: f32[1,1,2], index: 7, kind: output, shape index: {1}]  }
   0x1   :  { %v227_v0 = vld [vmem:[%s339_s2 + $0x8] sm:$0xff]   ;;  %213 = vmatprep.subr.bf16.mxu0 %v260_v1  ;;  %v228_v2 = vld [vmem:[%s339_s2] sm:$0xff]   ;;  %217 = vmatprep.mubr.msk.bf16.mxu0 %vm261_vm0, %v260_v1 }
   0x2   :  { %214 = vmatpush3.bf16.msra.mxu0 %v227_v0 }
   0x3   :  { %215 = vmatprep.subr.bf16.mxu0 %v260_v1 }
   0x4   :  { %14 = vsyncpa [#allocation4], 0  ;;  %v229_v3 = vld [vmem:[%s337_s0] sm:$0xff]   ;;  %vm58_vm1 = vcmask 261120   ;;  %v262_v5 = vmov 0   ;;  %v159_v6 = vld [vmem:[%s338_s1 + $0x8] sm:$0xff]  ;;  %v160_v49 = vlaneseq  ;;  %v152_v52 = vstv %s342_s5 }
   0x5   :  { %v158_v4 = vld [vmem:[%s338_s1] sm:$0xff]  ;;  %225 = vset.pattern.permute.xlu1 %v262_v5  ;;  %226 = vset.pattern.permute.xlu0 %v262_v5  ;;  %vm144_vm4 = vcmask 130048   ;;  %vm155_vm5 = vcmask 7168   ;;  %vm172_vm7 = vcmask 15360   ;;  %s263_s5 = smov [#allocation3]   ;;  %vm182_vm9 = vcmask 8192  }
   0x6   :  { %216 = vmatpush3.bf16.msra.mxu0 %v228_v2  ;;  %163 = vperm.xlu1 %225, %v158_v4   ;;  %v202_v7 = vld [vmem:[%s340_s3] ss:$0 sm:$0xff]  ;;  %v161_v51 = vand.u32 127, %v160_v49  ;;  %s192_s16 = sshll.u32 %s263_s5, 4  ;;  %s193_s16 = int_to_ptr.vmem [resolvable:$true] %s192_s16 }
   0x7   :  { %v209_v39 = vld [vmem:[%s341_s4] ss:$0 sm:$0xff]  ;;  %s238_s17 = scalar_lea.vmem %s193_s16, 16  ;;  %s242_s18 = scalar_lea.vmem %s193_s16, 32 }
   0x8   :  { %p239_p0 = scmp.ne.s32.totalorder %s193_s16, %s238_s17  ;;  %p243_p1 = scmp.lt.s32.totalorder %s193_s16, %s193_s16 }
   0x9   :  { %218 = vmatmul.mubr.msk.bf16.vlgmr.msra.gmra.mxu0 %vm58_vm1, %v229_v3  ;;  %p244_p2 = scmp.lt.s32.totalorder %s242_s18, %s238_s17 }
   0xa   :  { %166 = vperm.xlu1 %225, %v159_v6  }
   0xb   :  { %p245_p3 = por %p244_p2, %p243_p1 }
   0xd   :  { %p246_p4 = pnand %p245_p3, %p239_p0 }
  0x81   :  { %v164_v50 = vpop.permute.xlu1 %163 }
  0x82   :  { %vm168_vm6 = vcmp.eq.s32.totalorder %v161_v51, %v164_v50 }
  0x85   :  { %v167_v55 = vpop.permute.xlu1 %166 }
  0x86   :  { %vm169_vm8 = vcmp.eq.s32.totalorder %v161_v51, %v167_v55 }
  0xc9   :  { %v96_v8 = vpop.f32.mrf.mxu0 }
  0xca   :  { %v97_v9 = vadd.f32 %v202_v7, %v96_v8 }
  0xcb   :  { %v219_v10 = vpop.f32.mrf.mxu0 }
  0xcc   :  { %v105_v11 = vand.u32 2147483647, %v97_v9  ;;  %v103_v32 = vmax.f32 %v97_v9, 0.0 }
  0xcd   :  { %v99_v12 = vpop.f32.mrf.mxu0 }
  0xce   :  { %v107_v13 = vsub.f32 0.0, %v105_v11  ;;  %v100_v14 = vadd.f32 %v202_v7, %v99_v12 }
  0xcf   :  { %v220_v15 = vpop.f32.mrf.mxu0 }
  0xd0   :  { %v109_v16 = vmul.f32 1.442695, %v107_v13  ;;  %v106_v17 = vand.u32 2147483647, %v100_v14  ;;  %v104_v40 = vmax.f32 %v100_v14, 0.0 }
  0xd2   :  { %230 = vpow2.f32 %v109_v16  ;;  %v108_v18 = vsub.f32 0.0, %v106_v17 }
  0xd4   :  { %v111_v19 = vmul.f32 1.442695, %v108_v18 }
  0xd6   :  { %232 = vpow2.f32 %v111_v19 }
  0xdf   :  { %v231_v20 = vpop.eup %230 }
  0xe0   :  { %v113_v21 = vadd.f32 1.0, %v231_v20  ;;  %v116_v24 = vmul.f32 -0.5, %v231_v20  ;;  %v119_v27 = vand.u32 2147483647, %v231_v20 }
  0xe2   :  { %234 = vlog2.f32 %v113_v21  ;;  %v117_v26 = vadd.f32 1.0, %v116_v24  ;;  %vm120_vm2 = vcmp.lt.f32.partialorder %v119_v27, 0.0004427343 }
  0xe3   :  { %v233_v22 = vpop.eup %232 }
  0xe4   :  { %v122_v23 = vadd.f32 1.0, %v233_v22  ;;  %v125_v25 = vmul.f32 -0.5, %v233_v22  ;;  %v118_v31 = vmul.f32 %v231_v20, %v117_v26  ;;  %v128_v33 = vand.u32 2147483647, %v233_v22 }
  0xe6   :  { %236 = vlog2.f32 %v122_v23  ;;  %v126_v29 = vadd.f32 1.0, %v125_v25  ;;  %vm129_vm3 = vcmp.lt.f32.partialorder %v128_v33, 0.0004427343 }
  0xe8   :  { %v127_v38 = vmul.f32 %v233_v22, %v126_v29 }
  0xef   :  { %v235_v28 = vpop.eup %234 }
  0xf0   :  { %v115_v30 = vmul.f32 0.6931472, %v235_v28 }
  0xf2   :  { %v121_v34 = vsel %vm120_vm2, %v118_v31, %v115_v30 }
  0xf3   :  { %v237_v35 = vpop.eup %236  ;;  %v131_v36 = vadd.f32 %v121_v34, %v103_v32 }
  0xf4   :  { %v124_v37 = vmul.f32 0.6931472, %v237_v35 }
  0xf5   :  { %v207_v41 = vadd.f32 -0.6931472, %v131_v36 }
  0xf6   :  { %v130_v42 = vsel %vm129_vm3, %v127_v38, %v124_v37 }
  0xf7   :  { %v132_v43 = vadd.f32 %v130_v42, %v104_v40  ;;  %v142_v44 = vmul.f32 %v209_v39, %v207_v41 }
  0xf9   :  { %v145_v45 = vsel %vm144_vm4, %v142_v44, 0.0  ;;  %v208_v46 = vadd.f32 -0.6931472, %v132_v43 }
  0xfa   :  { %146 = vadd.xlane.f32.xlu0 %v145_v45 }
  0xfb   :  { %v143_v47 = vmul.f32 %v209_v39, %v208_v46 }
  0xfd   :  { %v148_v48 = vsel %vm144_vm4, %v143_v47, 0.0 }
  0xfe   :  { %149 = vadd.xlane.f32.xlu0 %v148_v48 }
 0x183   :  { %v147_v53 = vpop.xlane.xlu0 %146 }
 0x184   :  { %v153_v54 = vadd.f32 %v152_v52, %v147_v53 }
 0x186   :  { %156 = vst.msk [vmem:[%s343_s6] sm:$0xff] %vm155_vm5, %v153_v54  ;;  %v170_v57 = vsel %vm168_vm6, %v153_v54, 0.0 }
 0x187   :  { %v150_v56 = vpop.xlane.xlu0 %149  ;;  %v173_v60 = vsel %vm172_vm7, %v170_v57, 0.0 }
 0x188   :  { %v154_v58 = vadd.f32 %v152_v52, %v150_v56 }
 0x18a   :  { %157 = vst.msk [vmem:[%s343_s6 + $0x8] sm:$0xff] %vm155_vm5, %v154_v58  ;;  %v171_v59 = vsel %vm169_vm8, %v154_v58, 0.0 }
 0x18b   :  { %v174_v61 = vsel %vm172_vm7, %v171_v59, 0.0 }
 0x18c   :  { %v175_v62 = vadd.f32 %v174_v61, %v173_v60 }
 0x18e   :  { %v176_v63 = vrot.slane %v175_v62, 4 }
 0x190   :  { %v177_v0 = vadd.f32 %v176_v63, %v175_v62 }
 0x192   :  { %v178_v1 = vrot.slane %v177_v0, 2 }
 0x194   :  { %v179_v2 = vadd.f32 %v178_v1, %v177_v0 }
 0x196   :  { %v180_v3 = vrot.slane %v179_v2, 1 }
 0x198   :  { %v181_v4 = vadd.f32 %v180_v3, %v179_v2 }
 0x19a   :  { %183 = vst.msk [vmem:[#allocation3] sm:$0x1] %vm182_vm9, %v181_v4 }
 0x19b   :  { %249 = shalt.err (!%p246_p4)
}
 0x19c   :  { %195 = dma.vmem_to_hbm [thread:$0]  %s193_s16, 16, %s344_s7, [#allocation4]  }
 0x19d   :  { %258 = dma.done.wait [#allocation4], 16  }
 0x19e   :  { %259 = vsyncadd [#allocation4], 4294967280 }
 0x19f   :  { %201 = vsyncpa [#allocation4], 1 }

</bundles_post_ra>
